<compile_context>
chip_gen: v5e
topology: v5e:2x2
jax: 0.10.0
libtpu: 0.0.40
codegen_flags: <defaults>
</compile_context>

<pallas_src>
import jax
import jax.numpy as jnp
import numpy as np
from jax import lax
from jax.experimental import pallas as pl
from jax.experimental.pallas import tpu as pltpu

_LANE = 128
_MAX_TILE_N = 4096  # pixels per block; safe for v5e/v6e/v7x VMEM budgets


def _inv1x1_kernel(w_ref, x_ref, o_ref):
    """w_ref: (C, C); x_ref: (C, TN); o_ref: (C, TN). One MXU matmul per block."""
    o_ref[...] = jnp.dot(
        w_ref[...], x_ref[...], preferred_element_type=jnp.float32
    ).astype(o_ref.dtype)


def invertible_1x1_conv(x_nchw, weight, *, reverse=False):
    """x_nchw: (B, C, H, W); weight: (C, C, 1, 1). Returns (B, C, H, W)."""
    B, C, H, W = x_nchw.shape
    assert weight.shape == (C, C, 1, 1)
    w2 = weight[:, :, 0, 0]
    if reverse:
        # Matrix inverse is plain-JAX glue in the wrapper (matches torch.inverse).
        w2 = jnp.linalg.inv(w2)

    # --- glue: channels-first flattening so pixels sit on the lane axis ---
    N = B * H * W
    x2 = jnp.transpose(x_nchw.reshape(B, C, H * W), (1, 0, 2)).reshape(C, N)

    # Pad the pixel axis to a lane-dense tile multiple.
    n_lane = ((N + _LANE - 1) // _LANE) * _LANE
    tn = n_lane if n_lane <= _MAX_TILE_N else _MAX_TILE_N
    n_pad = ((N + tn - 1) // tn) * tn
    if n_pad != N:
        x2 = jnp.pad(x2, ((0, 0), (0, n_pad - N)))

    out2 = pl.pallas_call(
        _inv1x1_kernel,
        out_shape=jax.ShapeDtypeStruct((C, n_pad), x_nchw.dtype),
        grid_spec=pltpu.PrefetchScalarGridSpec(
            num_scalar_prefetch=0,
            grid=(n_pad // tn,),
            in_specs=[
                pl.BlockSpec((C, C), lambda i: (0, 0)),     # weight: resident
                pl.BlockSpec((C, tn), lambda i: (0, i)),    # pixel tile (lane-dense)
            ],
            out_specs=pl.BlockSpec((C, tn), lambda i: (0, i)),
        ),
        compiler_params=pltpu.CompilerParams(dimension_semantics=("parallel",)),
    )(w2.astype(x_nchw.dtype), x2)

    out = out2[:, :N].reshape(C, B, H * W)
    return jnp.transpose(out, (1, 0, 2)).reshape(B, C, H, W)


def _reference(x, weight, reverse=False):
    """Pure-JAX reference matching PyTorch F.conv2d(x, W[, W^-1]) semantics."""
    w = weight[:, :, 0, 0]
    if reverse:
        w = jnp.linalg.inv(w)
    return lax.conv_general_dilated(
        x, w[:, :, None, None], window_strides=(1, 1), padding=[(0, 0), (0, 0)],
        dimension_numbers=("NCHW", "OIHW", "NCHW"),
    )


if __name__ == "__main__":
    B, C, H, W = 2, 4, 16, 16

    key = jax.random.PRNGKey(0)
    kx, kw = jax.random.split(key)
    x = jax.random.normal(kx, (B, C, H, W), dtype=jnp.float32)
    # Orthogonal init via QR, matching the PyTorch module's constructor.
    q, _ = jnp.linalg.qr(jax.random.normal(kw, (C, C), dtype=jnp.float32))
    weight = q.reshape(C, C, 1, 1)

    # Forward path (reverse=False).
    y = jax.block_until_ready(invertible_1x1_conv(x, weight))
    y_ref = jax.block_until_ready(_reference(x, weight))
    np.testing.assert_allclose(np.asarray(y), np.asarray(y_ref), rtol=1e-4, atol=1e-4)

    # Reverse path: conv with W^{-1} undoes the forward conv (invertibility check).
    x_rec = jax.block_until_ready(invertible_1x1_conv(y, weight, reverse=True))
    np.testing.assert_allclose(np.asarray(x_rec), np.asarray(x), rtol=1e-4, atol=1e-4)

    print("KERNEL_OK")
</pallas_src>

<mosaic_0001>
module attributes {stable_mosaic.version = 11 : i64} {
  func.func @_inv1x1_kernel(%arg0: i32, %arg1: memref<4x4xf32, #tpu.memory_space<vmem>>, %arg2: memref<4x512xf32, #tpu.memory_space<vmem>>, %arg3: memref<4x512xf32, #tpu.memory_space<vmem>>) attributes {dimension_semantics = [#tpu.dimension_semantics<parallel>], iteration_bounds = array<i64: 1>, scalar_prefetch = 0 : i64, scratch_operands = 0 : i64, tpu.core_type = #tpu.core_type<tc>, window_params = [{pipeline_mode = #tpu.pipeline_mode<synchronous>, transform_indices = @transform_0, window_bounds = array<i64: 4, 4>}, {transform_indices = @transform_1, window_bounds = array<i64: 4, 512>}, {transform_indices = @transform_2, window_bounds = array<i64: 4, 512>}]} {
    %c0 = arith.constant 0 : index
    %c0_0 = arith.constant 0 : index
    %0 = vector.load %arg1[%c0, %c0_0] : memref<4x4xf32, #tpu.memory_space<vmem>>, vector<4x4xf32>
    %c0_1 = arith.constant 0 : index
    %c0_2 = arith.constant 0 : index
    %1 = vector.load %arg2[%c0_1, %c0_2] : memref<4x512xf32, #tpu.memory_space<vmem>>, vector<4x512xf32>
    %cst = arith.constant dense<0.000000e+00> : vector<4x512xf32>
    %2 = tpu.matmul %0, %1, %cst {dimension_numbers = #tpu.dot_dimension_numbers<[1], [0], [0], [1], [0, 0, 1, 1], [], []>} : vector<4x4xf32>, vector<4x512xf32>, vector<4x512xf32> -> vector<4x512xf32>
    %c0_3 = arith.constant 0 : index
    %c0_4 = arith.constant 0 : index
    %3 = vector.load %arg3[%c0_3, %c0_4] : memref<4x512xf32, #tpu.memory_space<vmem>>, vector<4x512xf32>
    tpu.vector_store %arg3[%c0_3, %c0_4], %2 {strides = array<i32>} : memref<4x512xf32, #tpu.memory_space<vmem>>, vector<4x512xf32>,
    return
  }
  func.func @transform_0(%arg0: i32) -> (i32, i32) {
    %c0_i32 = arith.constant 0 : i32
    %c0_i32_0 = arith.constant 0 : i32
    %c0_i32_1 = arith.constant 0 : i32
    return %c0_i32, %c0_i32_0 : i32, i32
  }
  func.func @transform_1(%arg0: i32) -> (i32, i32) {
    %c0_i32 = arith.constant 0 : i32
    %c0_i32_0 = arith.constant 0 : i32
    return %c0_i32, %arg0 : i32, i32
  }
  func.func @transform_2(%arg0: i32) -> (i32, i32) {
    %c0_i32 = arith.constant 0 : i32
    %c0_i32_0 = arith.constant 0 : i32
    return %c0_i32, %arg0 : i32, i32
  }
}

</mosaic_0001>

<bundles_post_ra>
// kernel: tpu_custom_call.1
= control target key start
LH: loop header
LB: loop body
LE: loop exit
PB: predicated region body
PF: predicated region fallthrough
CT: control target
= control target key end

     0   :  { %7 = vsyncpa [#allocation3], 0  ;;  %s297_s0 = inlined_call_operand.hbm [shape: f32[4,4], index: 0, kind: input, shape index: {}]   ;;  %s298_s1 = inlined_call_operand.hbm [shape: f32[4,512], index: 1, kind: input, shape index: {}]   ;;  %s299_s2 = inlined_call_operand.hbm [shape: f32[4,512], index: 2, kind: output, shape index: {}]  }
   0x1   :  { %8 = vsyncpa [#allocation6], 0 }
   0x2   :  { %9 = vsyncpa [#allocation4], 0  ;;  %s15_s11 = sshll.u32 %s297_s0, 4  ;;  %s264_s12 = smov [#allocation2]   ;;  %s16_s11 = int_to_ptr.hbm [resolvable:$true] %s15_s11 }
   0x3   :  { %s17_s13 = sshll.u32 %s264_s12, 4  ;;  %s26_s16 = sshll.u32 %s298_s1, 4  ;;  %s18_s13 = int_to_ptr.vmem [resolvable:$true] %s17_s13  ;;  %s27_s16 = int_to_ptr.hbm [resolvable:$true] %s26_s16 }
   0x4   :  { %20 = dma.hbm_to_vmem [thread:$0]  %s16_s11, 64, %s18_s13, [#allocation3]  }
   0x5   :  { %s265_s17 = smov [#allocation5]  }
   0x6   :  { %s28_s18 = sshll.u32 %s265_s17, 4  ;;  %s29_s18 = int_to_ptr.vmem [resolvable:$true] %s28_s18 }
   0x7   :  { %31 = dma.hbm_to_vmem [thread:$0]  %s27_s16, 256, %s29_s18, [#allocation6]  }
   0x8   :  { %258 = dma.done.wait [#allocation3], 64  }
   0x9   :  { %259 = vsyncadd [#allocation3], 4294967232 }
   0xa   :  { %260 = dma.done.wait [#allocation6], 256  }
   0xb   :  { %261 = vsyncadd [#allocation6], 4294967040  ;;  %v42_v0 = vld [vmem:[#allocation5 + $0x8] sm:$0xff]  ;;  %v41_v1 = vld [vmem:[#allocation5] sm:$0xff]  ;;  %vm56_vm0 = vcmask 1043456   ;;  %vm52_vm1 = vcmask 31744  }
   0xc   :  { %47 = vst [vmem:[#allocation1 + $0x10] ss:$2 sm:$0xff] %v42_v0  ;;  %v40_v2 = vld [vmem:[#allocation2] sm:$0xf]  ;;  %s266_s0 = smov [#allocation7]   ;;  %s164_s21 = sshll.u32 %s299_s2, 4  ;;  %s165_s21 = int_to_ptr.hbm [resolvable:$true] %s164_s21 }
   0xd   :  { %45 = vst [vmem:[#allocation1] ss:$2 sm:$0xff] %v41_v1  ;;  %s162_s1 = sshll.u32 %s266_s0, 4  ;;  %s163_s1 = int_to_ptr.vmem [resolvable:$true] %s162_s1 }
  0x13   :  { %v51_v3 = vld.sshfl [vmem:[#allocation1 + $0x18] sm:$0xff pattern:$0x75316420]  ;;  %v50_v4 = vld.sshfl [vmem:[#allocation1 + $0x10] sm:$0xff pattern:$0x75316420] }
  0x14   :  { %181 = vmatpush.msk.msra.mxu3 %vm56_vm0, %v51_v3  ;;  %179 = vmatpush.msk.msra.mxu2 %vm56_vm0, %v50_v4  ;;  %v49_v5 = vld.sshfl [vmem:[#allocation1 + $0x8] sm:$0xff pattern:$0x75316420]  ;;  %v48_v6 = vld.sshfl [vmem:[#allocation1] sm:$0xff pattern:$0x75316420] }
  0x15   :  { %182 = vmatmul.msk.f32.vlgmr.msra.gmra.mxu3 %vm52_vm1, %v40_v2  ;;  %180 = vmatmul.msk.f32.vlgmr.msra.gmra.mxu2 %vm52_vm1, %v40_v2 }
  0x16   :  { %177 = vmatpush.msk.msra.mxu1 %vm56_vm0, %v49_v5  ;;  %175 = vmatpush.msk.msra.mxu0 %vm56_vm0, %v48_v6 }
  0x17   :  { %178 = vmatmul.msk.f32.vlgmr.msra.gmra.mxu1 %vm52_vm1, %v40_v2  ;;  %176 = vmatmul.msk.f32.vlgmr.msra.gmra.mxu0 %vm52_vm1, %v40_v2 }
  0x94   :  { %v102_v7 = vpop.f32.mrf.mxu1  ;;  %v82_v8 = vpop.f32.mrf.mxu0 }
  0x95   :  { %v149_v9 = vrot.slane %v102_v7, 4 }
  0x97   :  { %v151_v10 = vsel %vm56_vm0, %v82_v8, %v149_v9 }
  0x98   :  { %v142_v11 = vpop.f32.mrf.mxu3  ;;  %155 = vst [vmem:[#allocation7] sm:$0xff] %v151_v10  ;;  %v122_v12 = vpop.f32.mrf.mxu2 }
  0x99   :  { %v150_v13 = vrot.slane %v142_v11, 4 }
  0x9b   :  { %v152_v14 = vsel %vm56_vm0, %v122_v12, %v150_v13 }
  0x9c   :  { %156 = vst [vmem:[#allocation7 + $0x8] sm:$0xff] %v152_v14 }
  0x9d   :  { %167 = dma.vmem_to_hbm [thread:$0]  %s163_s1, 256, %s165_s21, [#allocation4]  }
  0x9e   :  { %262 = dma.done.wait [#allocation4], 256  }
  0x9f   :  { %263 = vsyncadd [#allocation4], 4294967040 }
  0xa0   :  { %172 = vsyncpa [#allocation3], 1 }
  0xa1   :  { %173 = vsyncpa [#allocation6], 1 }
  0xa2   :  { %174 = vsyncpa [#allocation4], 1 }

</bundles_post_ra>
